<compile_context>
chip_gen: v7x
topology: tpu7x:2x2x1
jax: 0.10.0
libtpu: 0.0.40
codegen_flags: <defaults>
</compile_context>

<pallas_src>
import jax
import jax.numpy as jnp
from jax.experimental import pallas as pl
from jax.experimental.pallas import tpu as pltpu


def _downsample_fused_kernel(xq_ref, w_ref, o_ref):
    """Fused 3x3 conv (pad=1, no bias) + PixelUnshuffle(2) for one batch element.

    xq_ref: (1, H2+1, W2+1, 4*Cin)  2x2 space-to-depth blocked, zero-halo-padded input
    w_ref : (16*Cin, 4*Cout)        fused conv+unshuffle weight matrix (2-D, lane-dense)
    o_ref : (1, H2, W2, 4*Cout)     PixelUnshuffle'd channels-last output
    """
    H2, W2, Nout = o_ref.shape[1], o_ref.shape[2], o_ref.shape[3]
    Kc = xq_ref.shape[3]            # 4 * Cin
    M = H2 * W2

    xq = xq_ref[0]                  # (H2+1, W2+1, 4*Cin), native dtype (no upcast)

    acc = jnp.zeros((M, Nout), dtype=jnp.float32)
    # Four statically-unrolled shifted block views.  `a` (block-row) shifts are on
    # the outer dim and free; only b == 1 is a sublane (block-col) shift, and it
    # acts on lane-dense 4*Cin-wide data.  Each matmul is K=4*Cin, N=4*Cout.
    for a in (0, 1):
        rows = xq[a:a + H2]                                   # (H2, W2+1, 4*Cin)
        for b in (0, 1):
            chunk = rows[:, b:b + W2, :].reshape(M, Kc)       # (M, 4*Cin)
            wk = w_ref[(a * 2 + b) * Kc:(a * 2 + b + 1) * Kc, :]
            acc = acc + jnp.dot(chunk, wk, preferred_element_type=jnp.float32)

    o_ref[0] = acc.reshape(H2, W2, Nout).astype(o_ref.dtype)


def downsample(x, weight):
    """Forward of `Downsample`: Conv2d(Cin, Cin//2, 3, pad=1, bias=False) + PixelUnshuffle(2).

    x:      (B, Cin, H, W)   NCHW, like the PyTorch module.
    weight: (Cout, Cin, 3, 3) with Cout = Cin // 2.
    returns (B, 4*Cout, H//2, W//2) == (B, 2*Cin, H//2, W//2).
    """
    B, Cin, H, W = x.shape
    Cout, Cin_w, KH, KW = weight.shape
    assert Cin_w == Cin and KH == 3 and KW == 3
    assert H % 2 == 0 and W % 2 == 0, "PixelUnshuffle(2) needs even spatial dims"
    H2, W2 = H // 2, W // 2
    Nout = 4 * Cout

    # ---- Input layout pass (one fused XLA pass over x): NCHW -> NHWC, 1-pixel zero
    # halo (the conv's padding=1), and 2x2 space-to-depth blocking:
    #   xq[b, hb, wb, (s*2 + t)*Cin + ci] = x_pad[b, 2*hb + s, 2*wb + t, ci]
    x_nhwc = jnp.transpose(x, (0, 2, 3, 1))                        # (B, H, W, Cin)
    x_pad = jnp.pad(x_nhwc, ((0, 0), (1, 1), (1, 1), (0, 0)))      # (B, H+2, W+2, Cin)
    xq = x_pad.reshape(B, H2 + 1, 2, W2 + 1, 2, Cin)
    xq = jnp.transpose(xq, (0, 1, 3, 2, 4, 5)).reshape(B, H2 + 1, W2 + 1, 4 * Cin)

    # ---- Fused conv + PixelUnshuffle weight: (16*Cin, 4*Cout), 2-D and lane-dense.
    # Row index ((p//2)*8 + (q//2)*4 + (p%2)*2 + q%2)*Cin + ci  <->  4x4-patch offset (p, q);
    # column index c*4 + i*2 + j matches PyTorch PixelUnshuffle channel ordering.
    wt = jnp.transpose(weight, (2, 3, 1, 0))                       # (3, 3, Cin, Cout)
    w_big = jnp.zeros((16, Cin, Cout, 4), dtype=weight.dtype)
    for p in range(4):
        for q in range(4):
            pq = (p // 2) * 8 + (q // 2) * 4 + (p % 2) * 2 + (q % 2)
            for i in range(2):
                for j in range(2):
                    dy, dx = p - i, q - j
                    if 0 <= dy < 3 and 0 <= dx < 3:
                        w_big = w_big.at[pq, :, :, i * 2 + j].set(wt[dy, dx])
    w_big = w_big.reshape(16 * Cin, Nout)

    # TODO(synk): for large images / v7x's 64 MiB VMEM, add halo'd H2-row tiling
    # (manual DMA of the 1-block-row overlapping windows) plus a second "parallel"
    # grid axis so both v7x TensorCores are fed when B == 1, and raise
    # vmem_limit_bytes on v5e/v6e for big row blocks; whole images fit VMEM at demo sizes.
    out_k = pl.pallas_call(
        _downsample_fused_kernel,
        out_shape=jax.ShapeDtypeStruct((B, H2, W2, Nout), x.dtype),
        grid_spec=pltpu.PrefetchScalarGridSpec(
            num_scalar_prefetch=0,
            grid=(B,),
            in_specs=[
                pl.BlockSpec((1, H2 + 1, W2 + 1, 4 * Cin), lambda b: (b, 0, 0, 0)),
                pl.BlockSpec((16 * Cin, Nout), lambda b: (0, 0)),
            ],
            out_specs=pl.BlockSpec((1, H2, W2, Nout), lambda b: (b, 0, 0, 0)),
        ),
        compiler_params=pltpu.CompilerParams(
            # Batches are independent -> shard across TensorCores on megacore parts.
            dimension_semantics=("parallel",),
        ),
    )(xq, w_big)

    # ---- Output layout pass: channels-last (already PixelUnshuffle'd) -> NCHW.
    return jnp.transpose(out_k, (0, 3, 1, 2))


def _reference_downsample(x, weight):
    conv = jax.lax.conv_general_dilated(
        x, weight, window_strides=(1, 1), padding=((1, 1), (1, 1)),
        dimension_numbers=("NCHW", "OIHW", "NCHW"),
        precision=jax.lax.Precision.HIGHEST)
    B, Co, H, W = conv.shape
    y = conv.reshape(B, Co, H // 2, 2, W // 2, 2)   # [b, c, h2, i, w2, j]
    y = jnp.transpose(y, (0, 1, 3, 5, 2, 4))        # [b, c, i, j, h2, w2]
    return y.reshape(B, 4 * Co, H // 2, W // 2)


if __name__ == "__main__":
    key = jax.random.PRNGKey(0)
    kx, kw = jax.random.split(key)

    # Small shapes consistent with the module; n_feat=64 makes the fused output
    # channel dim 4*Cout = 128, i.e. exactly one lane-dense vreg width.
    B, n_feat, H, W = 2, 64, 16, 16
    x = jax.random.normal(kx, (B, n_feat, H, W), dtype=jnp.float32)
    # Conv2d(n_feat, n_feat // 2, 3, bias=False) weight, deterministic init.
    weight = 0.05 * jax.random.normal(
        kw, (n_feat // 2, n_feat, 3, 3), dtype=jnp.float32)

    out = jax.block_until_ready(jax.jit(downsample)(x, weight))

    ref = _reference_downsample(x, weight)
    assert out.shape == (B, 2 * n_feat, H // 2, W // 2), out.shape
    assert jnp.allclose(out, ref, atol=2e-3, rtol=2e-3), "mismatch vs reference"

    print("KERNEL_OK")
</pallas_src>

<mosaic_0001>
module attributes {stable_mosaic.version = 11 : i64} {
  func.func @_downsample_fused_kernel(%arg0: i32, %arg1: memref<1x9x9x256xf32, #tpu.memory_space<vmem>>, %arg2: memref<1024x128xf32, #tpu.memory_space<vmem>>, %arg3: memref<1x8x8x128xf32, #tpu.memory_space<vmem>>) attributes {dimension_semantics = [#tpu.dimension_semantics<parallel>], iteration_bounds = array<i64: 2>, scalar_prefetch = 0 : i64, scratch_operands = 0 : i64, tpu.core_type = #tpu.core_type<tc>, window_params = [{transform_indices = @transform_0, window_bounds = array<i64: 1, 9, 9, 256>}, {pipeline_mode = #tpu.pipeline_mode<synchronous>, transform_indices = @transform_1, window_bounds = array<i64: 1024, 128>}, {transform_indices = @transform_2, window_bounds = array<i64: 1, 8, 8, 128>}]} {
    %c0 = arith.constant 0 : index
    %c0_0 = arith.constant 0 : index
    %c0_1 = arith.constant 0 : index
    %c0_2 = arith.constant 0 : index
    %0 = vector.load %arg1[%c0, %c0_0, %c0_1, %c0_2] : memref<1x9x9x256xf32, #tpu.memory_space<vmem>>, vector<1x9x9x256xf32>
    %1 = vector.shape_cast %0 : vector<1x9x9x256xf32> to vector<9x9x256xf32>
    %cst = arith.constant 0.000000e+00 : f32
    %2 = vector.broadcast %cst : f32 to vector<64x128xf32>
    %3 = vector.extract_strided_slice %1 {offsets = [0, 0, 0], sizes = [8, 9, 256], strides = [1, 1, 1]} : vector<9x9x256xf32> to vector<8x9x256xf32>
    %4 = vector.extract_strided_slice %3 {offsets = [0, 0, 0], sizes = [8, 8, 256], strides = [1, 1, 1]} : vector<8x9x256xf32> to vector<8x8x256xf32>
    %5 = vector.shape_cast %4 : vector<8x8x256xf32> to vector<64x256xf32>
    %c0_3 = arith.constant 0 : index
    %c0_4 = arith.constant 0 : index
    %6 = vector.load %arg2[%c0_3, %c0_4] : memref<1024x128xf32, #tpu.memory_space<vmem>>, vector<256x128xf32>
    %cst_5 = arith.constant dense<0.000000e+00> : vector<64x128xf32>
    %7 = tpu.matmul %5, %6, %cst_5 {dimension_numbers = #tpu.dot_dimension_numbers<[1], [0], [0], [1], [0, 0, 1, 1], [], []>} : vector<64x256xf32>, vector<256x128xf32>, vector<64x128xf32> -> vector<64x128xf32>
    %8 = arith.addf %2, %7 : vector<64x128xf32>
    %9 = vector.extract_strided_slice %3 {offsets = [0, 1, 0], sizes = [8, 8, 256], strides = [1, 1, 1]} : vector<8x9x256xf32> to vector<8x8x256xf32>
    %10 = vector.shape_cast %9 : vector<8x8x256xf32> to vector<64x256xf32>
    %c256 = arith.constant 256 : index
    %c0_6 = arith.constant 0 : index
    %11 = vector.load %arg2[%c256, %c0_6] : memref<1024x128xf32, #tpu.memory_space<vmem>>, vector<256x128xf32>
    %cst_7 = arith.constant dense<0.000000e+00> : vector<64x128xf32>
    %12 = tpu.matmul %10, %11, %cst_7 {dimension_numbers = #tpu.dot_dimension_numbers<[1], [0], [0], [1], [0, 0, 1, 1], [], []>} : vector<64x256xf32>, vector<256x128xf32>, vector<64x128xf32> -> vector<64x128xf32>
    %13 = arith.addf %8, %12 : vector<64x128xf32>
    %14 = vector.extract_strided_slice %1 {offsets = [1, 0, 0], sizes = [8, 9, 256], strides = [1, 1, 1]} : vector<9x9x256xf32> to vector<8x9x256xf32>
    %15 = vector.extract_strided_slice %14 {offsets = [0, 0, 0], sizes = [8, 8, 256], strides = [1, 1, 1]} : vector<8x9x256xf32> to vector<8x8x256xf32>
    %16 = vector.shape_cast %15 : vector<8x8x256xf32> to vector<64x256xf32>
    %c512 = arith.constant 512 : index
    %c0_8 = arith.constant 0 : index
    %17 = vector.load %arg2[%c512, %c0_8] : memref<1024x128xf32, #tpu.memory_space<vmem>>, vector<256x128xf32>
    %cst_9 = arith.constant dense<0.000000e+00> : vector<64x128xf32>
    %18 = tpu.matmul %16, %17, %cst_9 {dimension_numbers = #tpu.dot_dimension_numbers<[1], [0], [0], [1], [0, 0, 1, 1], [], []>} : vector<64x256xf32>, vector<256x128xf32>, vector<64x128xf32> -> vector<64x128xf32>
    %19 = arith.addf %13, %18 : vector<64x128xf32>
    %20 = vector.extract_strided_slice %14 {offsets = [0, 1, 0], sizes = [8, 8, 256], strides = [1, 1, 1]} : vector<8x9x256xf32> to vector<8x8x256xf32>
    %21 = vector.shape_cast %20 : vector<8x8x256xf32> to vector<64x256xf32>
    %c768 = arith.constant 768 : index
    %c0_10 = arith.constant 0 : index
    %22 = vector.load %arg2[%c768, %c0_10] : memref<1024x128xf32, #tpu.memory_space<vmem>>, vector<256x128xf32>
    %cst_11 = arith.constant dense<0.000000e+00> : vector<64x128xf32>
    %23 = tpu.matmul %21, %22, %cst_11 {dimension_numbers = #tpu.dot_dimension_numbers<[1], [0], [0], [1], [0, 0, 1, 1], [], []>} : vector<64x256xf32>, vector<256x128xf32>, vector<64x128xf32> -> vector<64x128xf32>
    %24 = arith.addf %19, %23 : vector<64x128xf32>
    %25 = vector.shape_cast %24 : vector<64x128xf32> to vector<8x8x128xf32>
    %c0_12 = arith.constant 0 : index
    %c0_13 = arith.constant 0 : index
    %c0_14 = arith.constant 0 : index
    %c0_15 = arith.constant 0 : index
    %26 = vector.load %arg3[%c0_12, %c0_13, %c0_14, %c0_15] : memref<1x8x8x128xf32, #tpu.memory_space<vmem>>, vector<1x8x8x128xf32>
    %27 = vector.shape_cast %26 : vector<1x8x8x128xf32> to vector<8x8x128xf32>
    %28 = vector.shape_cast %25 : vector<8x8x128xf32> to vector<1x8x8x128xf32>
    tpu.vector_store %arg3[%c0_12, %c0_13, %c0_14, %c0_15], %28 {strides = array<i32>} : memref<1x8x8x128xf32, #tpu.memory_space<vmem>>, vector<1x8x8x128xf32>,
    return
  }
  func.func @transform_0(%arg0: i32) -> (i32, i32, i32, i32) {
    %c0_i32 = arith.constant 0 : i32
    %c0_i32_0 = arith.constant 0 : i32
    %c0_i32_1 = arith.constant 0 : i32
    %c0_i32_2 = arith.constant 0 : i32
    return %arg0, %c0_i32, %c0_i32_0, %c0_i32_1 : i32, i32, i32, i32
  }
  func.func @transform_1(%arg0: i32) -> (i32, i32) {
    %c0_i32 = arith.constant 0 : i32
    %c0_i32_0 = arith.constant 0 : i32
    %c0_i32_1 = arith.constant 0 : i32
    return %c0_i32, %c0_i32_0 : i32, i32
  }
  func.func @transform_2(%arg0: i32) -> (i32, i32, i32, i32) {
    %c0_i32 = arith.constant 0 : i32
    %c0_i32_0 = arith.constant 0 : i32
    %c0_i32_1 = arith.constant 0 : i32
    %c0_i32_2 = arith.constant 0 : i32
    return %arg0, %c0_i32, %c0_i32_0, %c0_i32_1 : i32, i32, i32, i32
  }
}

</mosaic_0001>

<bundles_post_ra>
// kernel: downsample.1
= control target key start
LH: loop header
LB: loop body
LE: loop exit
PB: predicated region body
PF: predicated region fallthrough
CT: control target
= control target key end

     0   :  { %7 = vsyncpa [#allocation3], 0  ;;  %s2153_s0 = inlined_call_operand.vmem [shape: f32[2,9,9,256], index: 0, kind: input, shape index: {}]   ;;  %s2154_s1 = inlined_call_operand.vmem [shape: f32[1024,128], index: 1, kind: input, shape index: {}]   ;;  %s2155_s2 = inlined_call_operand.hbm [shape: f32[2,8,8,128], index: 2, kind: output, shape index: {}]  }
   0x1   :  { %9 = vsyncpa [#allocation3 + $0x1], 0  ;;  %s1423_s9 = smov 0   ;;  %s1425_s10 = smov 0  }
   0x2   :  { %s1427_s11 = smov 0   ;;  %s1429_s12 = smov 0  }
   0x3 LB: > { %s1444_s13 = sadd.s32 4294967295, %s1403_s12   ;;  %s935_s14 = sadd.s32 4294967294, %s1403_s12   ;;  %s1403_s12 = sphi %s1429_s12, %s2161_s12   ;;  %s1399_s11 = sphi %s1427_s11, %s2160_s11   ;;  %s1395_s10 = sphi %s1425_s10, %s2159_s10   ;;  %s1391_s9 = sphi %s1423_s9, %s2158_s9  }
   0x4   : > { %s1448_s15 = sadd.s32 1, %s1403_s12   ;;  %s69_s16 = sadd.s32 1, %s1399_s11 }
   0x5   : > { %s66_s17 = ssub.s32 %s1403_s12, %s1448_s15  ;;  %p79_p0 = scmp.ne.s32.totalorder %s1399_s11, %s1395_s10 }
   0x6   : > { %p67_p1 = scmp.eq.s32.totalorder %s66_s17, 0  ;;  %p80_p2 = scmp.eq.s32.totalorder %s1444_s13, 1 }
   0x7   : > { %p85_p3 = scmp.ne.s32.totalorder %s1395_s10, %s1391_s9  ;;  %p86_p4 = scmp.eq.s32.totalorder %s935_s14, 1 }
   0x8   : > { %s1459_s18 = scalar_select %p67_p1, %s1399_s11, %s69_s16  }
   0x9   : > { %p1461_p5 = por %p80_p2, %p79_p0  ;;  %p1465_p6 = por %p86_p4, %p85_p3 }
   0xa   : > { %p938_p7 = scmp.ge.s32.totalorder %s1403_s12, 1  ;;  %p115_p8 = scmp.lt.s32.totalorder %s1403_s12, 3 }
   0xc   : > { %p116_p9 = pnand %p938_p7, %p115_p8 }
   0xd   : > { %v323_v0 = vld [vmem:[%s2154_s1 + $0x180] sm:$0xff] (!%p116_p9)  ;;  %v324_v1 = vld [vmem:[%s2154_s1 + $0x188] sm:$0xff] (!%p116_p9)  ;;  %v325_v11 = vld [vmem:[%s2154_s1 + $0x190] sm:$0xff] (!%p116_p9)  ;;  %p137_p10 = scmp.lt.s32.totalorder (!%p116_p9), %s1444_s13, 1  ;;  %vm242_vm0 = vcmask (!%p116_p9), 1046528   ;;  %s134_s23 = sand.u32 (!%p116_p9), 1, %s1395_s10  }
   0xe   : > { %119 = sbr.rel (%p116_p9) target bundleno = 343 (0x157), region = 28  ;;  %v194_v2 = vld [vmem:[%s2154_s1 + $0x80] sm:$0xff] (!%p116_p9)  ;;  %v1171_v3 = vpack.c.bf16 (!%p116_p9), %v324_v1, %v323_v0  ;;  %v195_v4 = vld [vmem:[%s2154_s1 + $0x88] sm:$0xff] (!%p116_p9)  ;;  %v326_v13 = vld [vmem:[%s2154_s1 + $0x198] sm:$0xff] (!%p116_p9)  ;;  %s939_s24 = sshll.u32 (!%p116_p9), %s134_s23, 6 }
   0xf   : > { %v307_v5 = vld [vmem:[%s2154_s1 + $0x100] sm:$0xff] (!%p116_p9)  ;;  %v308_v6 = vld [vmem:[%s2154_s1 + $0x108] sm:$0xff] (!%p116_p9)  ;;  %v1203_v7 = vpack.c.bf16 (!%p116_p9), %v195_v4, %v194_v2  ;;  %v196_v14 = vld [vmem:[%s2154_s1 + $0x90] sm:$0xff] (!%p116_p9)  ;;  %v1175_v16 = vpack.c.bf16 (!%p116_p9), %v326_v13, %v325_v11  ;;  %s2086_s25 = scalar_lea.vmem (!%p116_p9), [#allocation2], %s939_s24  ;;  %s946_s26 = sshll.u32 (!%p116_p9), %s1444_s13, 10 }
  0x10   : > { %v1173_v8 = vpack.c.bf16 (!%p116_p9), %v308_v6, %v307_v5  ;;  %v178_v9 = vld [vmem:[%s2154_s1] sm:$0xff] (!%p116_p9)  ;;  %v179_v10 = vld [vmem:[%s2154_s1 + $0x8] sm:$0xff] (!%p116_p9)  ;;  %1172 = vmatprep.subr.bf16.mxu0 (!%p116_p9), %v1171_v3  ;;  %v197_v15 = vld [vmem:[%s2154_s1 + $0x98] sm:$0xff] (!%p116_p9)  ;;  %s873_s27 = sshll.u32 (!%p116_p9), %s2086_s25, 4  ;;  %s1405_s6 = smov (!%p116_p9), [#allocation2]   ;;  %s2107_s27 = int_to_ptr.vmem [resolvable:$true] %s873_s27 }
  0x11   : > { %v1205_v12 = vpack.c.bf16 (!%p116_p9), %v179_v10, %v178_v9  ;;  %1204 = vmatprep.subr.bf16.mxu1 (!%p116_p9), %v1203_v7  ;;  %v1207_v17 = vpack.c.bf16 (!%p116_p9), %v197_v15, %v196_v14  ;;  %v309_v18 = vld [vmem:[%s2154_s1 + $0x110] sm:$0xff] (!%p116_p9)  ;;  %v310_v19 = vld [vmem:[%s2154_s1 + $0x118] sm:$0xff] (!%p116_p9)  ;;  %v327_v23 = vld [vmem:[%s2154_s1 + $0x1a0] sm:$0xff] (!%p116_p9)  ;;  %s1341_s5 = scalar_lea.vmem (!%p116_p9), %s2107_s27, 1024  ;;  %s1345_s7 = sshll.u32 (!%p116_p9), %s1405_s6, 4  ;;  %s1346_s7 = int_to_ptr.vmem [resolvable:$false] %s1345_s7 }
  0x12   : > { %1174 = vmatpush3.bf16.msra.mxu0 (!%p116_p9), %v1173_v8  ;;  %v180_v20 = vld [vmem:[%s2154_s1 + $0x10] sm:$0xff] (!%p116_p9)  ;;  %v1177_v21 = vpack.c.bf16 (!%p116_p9), %v310_v19, %v309_v18  ;;  %v181_v22 = vld [vmem:[%s2154_s1 + $0x18] sm:$0xff] (!%p116_p9)  ;;  %v328_v24 = vld [vmem:[%s2154_s1 + $0x1a8] sm:$0xff] (!%p116_p9)  ;;  %p1342_p11 = scmp.ne.s32.totalorder (!%p116_p9), %s2107_s27, %s1341_s5  ;;  %s1347_s8 = scalar_lea.vmem (!%p116_p9), %s1346_s7, 2048 }
  0x13   : > { %1206 = vmatpush3.bf16.msra.mxu1 (!%p116_p9), %v1205_v12  ;;  %1176 = vmatprep.subr.bf16.mxu0 (!%p116_p9), %v1175_v16  ;;  %v1209_v25 = vpack.c.bf16 (!%p116_p9), %v181_v22, %v180_v20  ;;  %v1179_v26 = vpack.c.bf16 (!%p116_p9), %v328_v24, %v327_v23  ;;  %v198_v27 = vld [vmem:[%s2154_s1 + $0xa0] sm:$0xff] (!%p116_p9)  ;;  %v199_v28 = vld [vmem:[%s2154_s1 + $0xa8] sm:$0xff] (!%p116_p9)  ;;  %v329_v35 = vld [vmem:[%s2154_s1 + $0x1b0] sm:$0xff] (!%p116_p9)  ;;  %p1348_p0 = scmp.lt.s32.totalorder (!%p116_p9), %s2107_s27, %s1346_s7  ;;  %p1349_p1 = scmp.lt.s32.totalorder (!%p116_p9), %s1347_s8, %s1341_s5 }
  0x14   : > { %1208 = vmatprep.subr.bf16.mxu1 (!%p116_p9), %v1207_v17  ;;  %v311_v29 = vld [vmem:[%s2154_s1 + $0x120] sm:$0xff] (!%p116_p9)  ;;  %v1211_v30 = vpack.c.bf16 (!%p116_p9), %v199_v28, %v198_v27  ;;  %v312_v31 = vld [vmem:[%s2154_s1 + $0x128] sm:$0xff] (!%p116_p9)  ;;  %v330_v36 = vld [vmem:[%s2154_s1 + $0x1b8] sm:$0xff] (!%p116_p9)  ;;  %p1343_p12 = pnand (!%p116_p9), %p1342_p11, %p1461_p5 }
  0x15   : > { %v182_v32 = vld [vmem:[%s2154_s1 + $0x20] sm:$0xff]  ;;  %v183_v33 = vld [vmem:[%s2154_s1 + $0x28] sm:$0xff]  ;;  %v1181_v34 = vpack.c.bf16 %v312_v31, %v311_v29  ;;  %v200_v37 = vld [vmem:[%s2154_s1 + $0xb0] sm:$0xff]  ;;  %v1183_v39 = vpack.c.bf16 %v330_v36, %v329_v35  ;;  %s1574_s30 = scalar_select %p137_p10, %s1444_s13, 1 }
  0x16   : > { %1178 = vmatpush3.bf16.msra.mxu0 %v1177_v21  ;;  %v1213_v38 = vpack.c.bf16 %v183_v33, %v182_v32  ;;  %v201_v40 = vld [vmem:[%s2154_s1 + $0xb8] sm:$0xff]  ;;  %v313_v41 = vld [vmem:[%s2154_s1 + $0x130] sm:$0xff]  ;;  %v331_v46 = vld [vmem:[%s2154_s1 + $0x1c0] sm:$0xff]  ;;  %s2112_s13 = scalar_lea.sflag [#allocation3], %s134_s23  ;;  %p1344_p13 = pneg %p1343_p12 }
  0x17   : > { %1210 = vmatpush3.bf16.msra.mxu1 %v1209_v25  ;;  %1180 = vmatprep.subr.bf16.mxu0 %v1179_v26  ;;  %v314_v42 = vld [vmem:[%s2154_s1 + $0x138] sm:$0xff]  ;;  %v1215_v43 = vpack.c.bf16 %v201_v40, %v200_v37  ;;  %v184_v44 = vld [vmem:[%s2154_s1 + $0x30] sm:$0xff]  ;;  %v332_v47 = vld [vmem:[%s2154_s1 + $0x1c8] sm:$0xff]  ;;  %s1299_s3 = smul.u32 288, %s1574_s30  ;;  %p1350_p2 = por %p1349_p1, %p1348_p0 }
  0x18   : > { %1212 = vmatprep.subr.bf16.mxu1 %v1211_v30  ;;  %v185_v45 = vld [vmem:[%s2154_s1 + $0x38] sm:$0xff]  ;;  %v202_v48 = vld [vmem:[%s2154_s1 + $0xc0] sm:$0xff]  ;;  %v203_v49 = vld [vmem:[%s2154_s1 + $0xc8] sm:$0xff]  ;;  %v1185_v50 = vpack.c.bf16 %v314_v42, %v313_v41  ;;  %v1187_v52 = vpack.c.bf16 %v332_v47, %v331_v46 }
  0x19   : > { %v1217_v51 = vpack.c.bf16 %v185_v45, %v184_v44  ;;  %v315_v53 = vld [vmem:[%s2154_s1 + $0x140] sm:$0xff]  ;;  %v316_v54 = vld [vmem:[%s2154_s1 + $0x148] sm:$0xff]  ;;  %v1219_v56 = vpack.c.bf16 %v203_v49, %v202_v48  ;;  %v333_v58 = vld [vmem:[%s2154_s1 + $0x1d0] sm:$0xff]  ;;  %s1631_s4 = scalar_lea.vmem %s2153_s0, %s1299_s3  ;;  %p1351_p3 = pnand %p1350_p2, %p1344_p13 }
  0x1a   : > { %1182 = vmatpush3.bf16.msra.mxu0 %v1181_v34  ;;  %v186_v55 = vld [vmem:[%s2154_s1 + $0x40] sm:$0xff]  ;;  %v187_v57 = vld [vmem:[%s2154_s1 + $0x48] sm:$0xff]  ;;  %v334_v59 = vld [vmem:[%s2154_s1 + $0x1d8] sm:$0xff]  ;;  %v1189_v62 = vpack.c.bf16 %v316_v54, %v315_v53 }
  0x1b   : > { %1214 = vmatpush3.bf16.msra.mxu1 %v1213_v38  ;;  %1184 = vmatprep.subr.bf16.mxu0 %v1183_v39  ;;  %v204_v60 = vld [vmem:[%s2154_s1 + $0xd0] sm:$0xff]  ;;  %v205_v61 = vld [vmem:[%s2154_s1 + $0xd8] sm:$0xff]  ;;  %v1221_v63 = vpack.c.bf16 %v187_v57, %v186_v55  ;;  %v1191_v0 = vpack.c.bf16 %v334_v59, %v333_v58  ;;  %v335_v6 = vld [vmem:[%s2154_s1 + $0x1e0] sm:$0xff] }
  0x1c   : > { %1216 = vmatprep.subr.bf16.mxu1 %v1215_v43  ;;  %v317_v1 = vld [vmem:[%s2154_s1 + $0x150] sm:$0xff]  ;;  %v318_v2 = vld [vmem:[%s2154_s1 + $0x158] sm:$0xff]  ;;  %v1223_v4 = vpack.c.bf16 %v205_v61, %v204_v60  ;;  %v336_v7 = vld [vmem:[%s2154_s1 + $0x1e8] sm:$0xff] }
  0x1d   : > { %v188_v3 = vld [vmem:[%s2154_s1 + $0x50] sm:$0xff]  ;;  %v189_v5 = vld [vmem:[%s2154_s1 + $0x58] sm:$0xff]  ;;  %v206_v8 = vld [vmem:[%s2154_s1 + $0xe0] sm:$0xff]  ;;  %v1193_v10 = vpack.c.bf16 %v318_v2, %v317_v1  ;;  %v1195_v14 = vpack.c.bf16 %v336_v7, %v335_v6 }
  0x1e   : > { %1186 = vmatpush3.bf16.msra.mxu0 %v1185_v50  ;;  %v207_v9 = vld [vmem:[%s2154_s1 + $0xe8] sm:$0xff]  ;;  %v319_v11 = vld [vmem:[%s2154_s1 + $0x160] sm:$0xff]  ;;  %v1225_v13 = vpack.c.bf16 %v189_v5, %v188_v3  ;;  %v145_v17 = vld [vmem:[%s1631_s4 + $0x18] sm:$0x1] }
  0x1f   : > { %1218 = vmatpush3.bf16.msra.mxu1 %v1217_v51  ;;  %1188 = vmatprep.subr.bf16.mxu0 %v1187_v52  ;;  %v320_v12 = vld [vmem:[%s2154_s1 + $0x168] sm:$0xff]  ;;  %v190_v15 = vld [vmem:[%s2154_s1 + $0x60] sm:$0xff]  ;;  %v1227_v18 = vpack.c.bf16 %v207_v9, %v206_v8  ;;  %v337_v20 = vld [vmem:[%s2154_s1 + $0x1f0] sm:$0xff]  ;;  %v247_v23 = vrot.slane %v145_v17, 1 }
  0x20   : > { %1220 = vmatprep.subr.bf16.mxu1 %v1219_v56  ;;  %v143_v16 = vld [vmem:[%s1631_s4 + $0x8] sm:$0xff]  ;;  %v338_v21 = vld [vmem:[%s2154_s1 + $0x1f8] sm:$0xff]  ;;  %v208_v24 = vld [vmem:[%s2154_s1 + $0xf0] sm:$0xff]  ;;  %v1197_v26 = vpack.c.bf16 %v320_v12, %v319_v11 }
  0x21   : > { %v191_v19 = vld [vmem:[%s2154_s1 + $0x68] sm:$0xff]  ;;  %v246_v22 = vrot.slane %v143_v16, 1  ;;  %508 = vmatprep.mubr.f32.mxu1 %v143_v16  ;;  %v209_v25 = vld [vmem:[%s2154_s1 + $0xf8] sm:$0xff]  ;;  %v321_v27 = vld [vmem:[%s2154_s1 + $0x170] sm:$0xff]  ;;  %v1199_v32 = vpack.c.bf16 %v338_v21, %v337_v20 }
  0x22   : > { %1190 = vmatpush3.bf16.msra.mxu0 %v1189_v62  ;;  %v322_v28 = vld [vmem:[%s2154_s1 + $0x178] sm:$0xff]  ;;  %v192_v29 = vld [vmem:[%s2154_s1 + $0x70] sm:$0xff]  ;;  %v1229_v31 = vpack.c.bf16 %v191_v19, %v190_v15  ;;  %v142_v34 = vld [vmem:[%s1631_s4] sm:$0xff]  ;;  %v1231_v36 = vpack.c.bf16 %v209_v25, %v208_v24 }
  0x23   : > { %1222 = vmatpush3.bf16.msra.mxu1 %v1221_v63  ;;  %1192 = vmatprep.subr.bf16.mxu0 %v1191_v0  ;;  %v248_v30 = vsel %vm242_vm0, %v246_v22, %v247_v23  ;;  %v193_v33 = vld [vmem:[%s2154_s1 + $0x78] sm:$0xff]  ;;  %v144_v35 = vld [vmem:[%s1631_s4 + $0x10] sm:$0x1]  ;;  %v565_v37 = vld [vmem:[%s2154_s1 + $0x280] sm:$0xff]  ;;  %v1201_v43 = vpack.c.bf16 %v322_v28, %v321_v27  ;;  %v243_v44 = vrot.slane %v142_v34, 1 }
  0x24   : > { %1224 = vmatprep.subr.bf16.mxu1 %v1223_v4  ;;  %403 = vmatprep.mubr.f32.mxu0 %v248_v30  ;;  %v566_v38 = vld [vmem:[%s2154_s1 + $0x288] sm:$0xff]  ;;  %v722_v39 = vld [vmem:[%s2154_s1 + $0x380] sm:$0xff]  ;;  %v149_v42 = vld [vmem:[%s1631_s4 + $0x38] sm:$0x1]  ;;  %v244_v45 = vrot.slane %v144_v35, 1  ;;  %v1233_v48 = vpack.c.bf16 %v193_v33, %v192_v29 }
  0x25   : > { %v723_v40 = vld [vmem:[%s2154_s1 + $0x388] sm:$0xff]  ;;  %v549_v46 = vld [vmem:[%s2154_s1 + $0x200] sm:$0xff]  ;;  %v1235_v49 = vpack.c.bf16 %v566_v38, %v565_v37  ;;  %v148_v52 = vld [vmem:[%s1631_s4 + $0x30] sm:$0x1]  ;;  %v253_v55 = vrot.slane %v149_v42, 1 }
  0x26   : > { %1194 = vmatpush3.bf16.msra.mxu0 %v1193_v10  ;;  %v1693_v41 = vld [vmem:[%s1631_s4 + $0x28] sm:$0xff]  ;;  %v706_v50 = vld [vmem:[%s2154_s1 + $0x300] sm:$0xff]  ;;  %v1267_v53 = vpack.c.bf16 %v723_v40, %v722_v39  ;;  %v567_v57 = vld [vmem:[%s2154_s1 + $0x290] sm:$0xff]  ;;  %v245_v62 = vsel %vm242_vm0, %v243_v44, %v244_v45  ;;  %v250_v1 = vrot.slane %v148_v52, 1 }
  0x27   : > { %1226 = vmatpush3.bf16.msra.mxu1 %v1225_v13  ;;  %1196 = vmatprep.subr.bf16.mxu0 %v1195_v14  ;;  %v550_v47 = vld [vmem:[%s2154_s1 + $0x208] sm:$0xff]  ;;  %v1706_v51 = vld [vmem:[%s1631_s4 + $0x20] sm:$0xff]  ;;  %v252_v54 = vrot.slane %v1693_v41, 1  ;;  %v568_v58 = vld [vmem:[%s2154_s1 + $0x298] sm:$0xff] }
  0x28   : > { %1228 = vmatprep.subr.bf16.mxu1 %v1227_v18  ;;  %v707_v56 = vld [vmem:[%s2154_s1 + $0x308] sm:$0xff]  ;;  %v551_v59 = vld [vmem:[%s2154_s1 + $0x210] sm:$0xff]  ;;  %v153_v61 = vld [vmem:[%s1631_s4 + $0x58] sm:$0x1]  ;;  %v1237_v63 = vpack.c.bf16 %v550_v47, %v549_v46  ;;  %v249_v0 = vrot.slane %v1706_v51, 1  ;;  %v1239_v10 = vpack.c.bf16 %v568_v58, %v567_v57 }
  0x29   : > { %v1723_v60 = vld [vmem:[%s1631_s4 + $0x48] sm:$0xff]  ;;  %v552_v2 = vld [vmem:[%s2154_s1 + $0x218] sm:$0xff]  ;;  %v724_v3 = vld [vmem:[%s2154_s1 + $0x390] sm:$0xff]  ;;  %v1269_v5 = vpack.c.bf16 %v707_v56, %v706_v50  ;;  %v1745_v9 = vsel %vm242_vm0, %v252_v54, %v253_v55  ;;  %v259_v12 = vrot.slane %v153_v61, 1 }
  0x2a   : > { %1198 = vmatpush3.bf16.msra.mxu0 %v1197_v26  ;;  %v725_v4 = vld [vmem:[%s2154_s1 + $0x398] sm:$0xff]  ;;  %v708_v6 = vld [vmem:[%s2154_s1 + $0x310] sm:$0xff]  ;;  %v1741_v7 = vld [vmem:[%s1631_s4 + $0x40] sm:$0xff]  ;;  %v258_v11 = vrot.slane %v1723_v60, 1  ;;  %v1767_v20 = vsel %vm242_vm0, %v249_v0, %v250_v1  ;;  %v1241_v21 = vpack.c.bf16 %v552_v2, %v551_v59 }
  0x2b   : > { %1230 = vmatpush3.bf16.msra.mxu1 %v1229_v31  ;;  %1200 = vmatprep.subr.bf16.mxu0 %v1199_v32  ;;  %v152_v8 = vld [vmem:[%s1631_s4 + $0x50] sm:$0x1]  ;;  %v709_v13 = vld [vmem:[%s2154_s1 + $0x318] sm:$0xff]  ;;  %v569_v14 = vld [vmem:[%s2154_s1 + $0x2a0] sm:$0xff]  ;;  %v1271_v16 = vpack.c.bf16 %v725_v4, %v724_v3  ;;  %v255_v22 = vrot.slane %v1741_v7, 1 }
  0x2c   : > { %1232 = vmatprep.subr.bf16.mxu1 %v1231_v36  ;;  %v570_v15 = vld [vmem:[%s2154_s1 + $0x2a8] sm:$0xff]  ;;  %v1760_v17 = vld [vmem:[%s2154_s1 + $0x220] sm:$0xff]  ;;  %v157_v19 = vld [vmem:[%s1631_s4 + $0x78] sm:$0x1]  ;;  %v256_v23 = vrot.slane %v152_v8, 1  ;;  %v1273_v27 = vpack.c.bf16 %v709_v13, %v708_v6  ;;  %v1791_v31 = vsel %vm242_vm0, %v258_v11, %v259_v12 }
  0x2d   : > { %v1763_v18 = vld [vmem:[%s1631_s4 + $0x68] sm:$0xff]  ;;  %v726_v25 = vld [vmem:[%s2154_s1 + $0x3a0] sm:$0xff]  ;;  %v156_v30 = vld [vmem:[%s1631_s4 + $0x70] sm:$0x1]  ;;  %v1243_v32 = vpack.c.bf16 %v570_v15, %v569_v14 }
  0x2e   : > { %1202 = vmatpush3.bf16.msra.mxu0 %v1201_v43  ;;  %v554_v24 = vld [vmem:[%s2154_s1 + $0x228] sm:$0xff]  ;;  %v1784_v28 = vld [vmem:[%s2154_s1 + $0x320] sm:$0xff]  ;;  %v264_v33 = vrot.slane %v1763_v18, 1  ;;  %v571_v36 = vld [vmem:[%s2154_s1 + $0x2b0] sm:$0xff]  ;;  %v1815_v43 = vsel %vm242_vm0, %v255_v22, %v256_v23  ;;  %v262_v46 = vrot.slane %v156_v30, 1 }
  0x2f   : > { %1234 = vmatpush3.bf16.msra.mxu1 %v1233_v48  ;;  %1236 = vmatprep.subr.bf16.mxu0 %v1235_v49  ;;  %v727_v26 = vld [vmem:[%s2154_s1 + $0x3a8] sm:$0xff]  ;;  %v1787_v29 = vld [vmem:[%s1631_s4 + $0x60] sm:$0xff]  ;;  %v572_v37 = vld [vmem:[%s2154_s1 + $0x2b8] sm:$0xff]  ;;  %v1245_v44 = vpack.c.bf16 %v554_v24, %v1760_v17 }
  0x30   : > { %1268 = vmatprep.subr.bf16.mxu1 %v1267_v53  ;;  %v711_v35 = vld [vmem:[%s2154_s1 + $0x328] sm:$0xff]  ;;  %v1275_v38 = vpack.c.bf16 %v727_v26, %v726_v25  ;;  %v1807_v39 = vld [vmem:[%s2154_s1 + $0x230] sm:$0xff]  ;;  %v161_v42 = vld [vmem:[%s1631_s4 + $0x98] sm:$0x1]  ;;  %v261_v45 = vrot.slane %v1787_v29, 1  ;;  %v1247_v56 = vpack.c.bf16 %v572_v37, %v571_v36 }
  0x31   : > { %404 = vmatmul.mubr.f32.vlgmr.msra.gmra.mrb[0].mxu0 %v245_v62  ;;  %v1810_v40 = vld [vmem:[%s1631_s4 + $0x88] sm:$0xff]  ;;  %v556_v47 = vld [vmem:[%s2154_s1 + $0x238] sm:$0xff]  ;;  %v728_v48 = vld [vmem:[%s2154_s1 + $0x3b0] sm:$0xff]  ;;  %v1277_v50 = vpack.c.bf16 %v711_v35, %v1784_v28  ;;  %v271_v58 = vrot.slane %v161_v42, 1 }
  0x32   : > { %509 = vmatmul.mubr.f32.vlgmr.msra.gmra.mrb[0].mxu1 %v142_v34  ;;  %1238 = vmatpush3.bf16.msra.mxu0 %v1237_v63  ;;  %v265_v34 = vrot.slane %v157_v19, 1  ;;  %v729_v49 = vld [vmem:[%s2154_s1 + $0x3b8] sm:$0xff]  ;;  %v1834_v52 = vld [vmem:[%s2154_s1 + $0x330] sm:$0xff]  ;;  %v1837_v53 = vld [vmem:[%s1631_s4 + $0x80] sm:$0xff]  ;;  %v270_v57 = vrot.slane %v1810_v40, 1  ;;  %v1865_v3 = vsel %vm242_vm0, %v261_v45, %v262_v46  ;;  %v1249_v4 = vpack.c.bf16 %v556_v47, %v1807_v39 }
  0x33   : > { %408 = vmatprep.mubr.f32.mxu0 %v1745_v9  ;;  %513 = vmatprep.mubr.f32.mxu1 %v1693_v41  ;;  %v160_v54 = vld [vmem:[%s1631_s4 + $0x90] sm:$0x1]  ;;  %v713_v59 = vld [vmem:[%s2154_s1 + $0x338] sm:$0xff]  ;;  %v573_v61 = vld [vmem:[%s2154_s1 + $0x2c0] sm:$0xff]  ;;  %v1279_v63 = vpack.c.bf16 %v729_v49, %v728_v48 }
  0x34   : > { %1270 = vmatpush3.bf16.msra.mxu1 %v1269_v5  ;;  %1240 = vmatprep.subr.bf16.mxu0 %v1239_v10  ;;  %v1841_v55 = vsel %vm242_vm0, %v264_v33, %v265_v34  ;;  %v574_v62 = vld [vmem:[%s2154_s1 + $0x2c8] sm:$0xff]  ;;  %v1857_v0 = vld [vmem:[%s2154_s1 + $0x240] sm:$0xff]  ;;  %v165_v2 = vld [vmem:[%s1631_s4 + $0xb8] sm:$0x1]  ;;  %v267_v5 = vrot.slane %v1837_v53, 1  ;;  %v268_v6 = vrot.slane %v160_v54, 1  ;;  %v1281_v12 = vpack.c.bf16 %v713_v59, %v1834_v52 }
  0x35   : > { %409 = vmatmul.mubr.f32.gmra.mrb[2].mxu0 %v1767_v20  ;;  %1272 = vmatprep.subr.bf16.mxu1 %v1271_v16  ;;  %v1860_v1 = vld [vmem:[%s1631_s4 + $0xa8] sm:$0xff]  ;;  %v730_v10 = vld [vmem:[%s2154_s1 + $0x3c0] sm:$0xff]  ;;  %v164_v15 = vld [vmem:[%s1631_s4 + $0xb0] sm:$0x1]  ;;  %v1891_v16 = vsel %vm242_vm0, %v270_v57, %v271_v58  ;;  %v1251_v17 = vpack.c.bf16 %v574_v62, %v573_v61 }
  0x36   : > { %514 = vmatmul.mubr.f32.gmra.mrb[2].mxu1 %v1706_v51  ;;  %1242 = vmatpush3.bf16.msra.mxu0 %v1241_v21  ;;  %v558_v8 = vld [vmem:[%s2154_s1 + $0x248] sm:$0xff]  ;;  %v1884_v13 = vld [vmem:[%s2154_s1 + $0x340] sm:$0xff]  ;;  %v276_v19 = vrot.slane %v1860_v1, 1  ;;  %v277_v21 = vrot.slane %v165_v2, 1  ;;  %v575_v23 = vld [vmem:[%s2154_s1 + $0x2d0] sm:$0xff]  ;;  %v274_v35 = vrot.slane %v164_v15, 1 }
  0x37   : > { %413 = vmatprep.mubr.f32.mxu0 %v1791_v31  ;;  %518 = vmatprep.mubr.f32.mxu1 %v1723_v60  ;;  %v731_v11 = vld [vmem:[%s2154_s1 + $0x3c8] sm:$0xff]  ;;  %v1887_v14 = vld [vmem:[%s1631_s4 + $0xa0] sm:$0xff]  ;;  %v576_v24 = vld [vmem:[%s2154_s1 + $0x2d8] sm:$0xff]  ;;  %v1253_v33 = vpack.c.bf16 %v558_v8, %v1857_v0 }
  0x38   : > { %1274 = vmatpush3.bf16.msra.mxu1 %v1273_v27  ;;  %1244 = vmatprep.subr.bf16.mxu0 %v1243_v32  ;;  %v715_v22 = vld [vmem:[%s2154_s1 + $0x348] sm:$0xff]  ;;  %v1283_v25 = vpack.c.bf16 %v731_v11, %v730_v10  ;;  %v1907_v26 = vld [vmem:[%s2154_s1 + $0x250] sm:$0xff]  ;;  %v1912_v27 = vld [vmem:[%s2154_s1 + $0x258] sm:$0xff]  ;;  %v1920_v32 = vsel %vm242_vm0, %v267_v5, %v268_v6  ;;  %v273_v34 = vrot.slane %v1887_v14, 1  ;;  %v1948_v46 = vsel %vm242_vm0, %v276_v19, %v277_v21 }
  0x39   : > { %414 = vmatmul.mubr.f32.gmra.mrb[4].mxu0 %v1815_v43  ;;  %1276 = vmatprep.subr.bf16.mxu1 %v1275_v38  ;;  %v1915_v28 = vld [vmem:[%s1631_s4 + $0xc8] sm:$0xff]  ;;  %v169_v30 = vld [vmem:[%s1631_s4 + $0xd8] sm:$0x1]  ;;  %v732_v36 = vld [vmem:[%s2154_s1 + $0x3d0] sm:$0xff]  ;;  %v1285_v39 = vpack.c.bf16 %v715_v22, %v1884_v13  ;;  %v1255_v47 = vpack.c.bf16 %v576_v24, %v575_v23  ;;  %v1257_v62 = vpack.c.bf16 %v1912_v27, %v1907_v26 }
  0x3a   : > { %519 = vmatmul.mubr.f32.gmra.mrb[4].mxu1 %v1741_v7  ;;  %1246 = vmatpush3.bf16.msra.mxu0 %v1245_v44  ;;  %v733_v37 = vld [vmem:[%s2154_s1 + $0x3d8] sm:$0xff]  ;;  %v1933_v38 = vld [vmem:[%s2154_s1 + $0x350] sm:$0xff]  ;;  %v1944_v44 = vld [vmem:[%s1631_s4 + $0xc0] sm:$0xff]  ;;  %v282_v48 = vrot.slane %v1915_v28, 1  ;;  %v283_v49 = vrot.slane %v169_v30, 1  ;;  %v1970_v61 = vsel %vm242_vm0, %v273_v34, %v274_v35 }
  0x3b   : > { %418 = vmatprep.mubr.f32.mxu0 %v1841_v55  ;;  %523 = vmatprep.mubr.f32.mxu1 %v1763_v18  ;;  %v1941_v42 = vld [vmem:[%s2154_s1 + $0x358] sm:$0xff]  ;;  %v168_v45 = vld [vmem:[%s1631_s4 + $0xd0] sm:$0x1]  ;;  %v1955_v52 = vld [vmem:[%s1631_s4 + $0xe8] sm:$0xff] }
  0x3c   : > { %1278 = vmatpush3.bf16.msra.mxu1 %v1277_v50  ;;  %1248 = vmatprep.subr.bf16.mxu0 %v1247_v56  ;;  %v577_v50 = vld [vmem:[%s2154_s1 + $0x2e0] sm:$0xff]  ;;  %v173_v54 = vld [vmem:[%s1631_s4 + $0xf8] sm:$0x1]  ;;  %v1287_v56 = vpack.c.bf16 %v733_v37, %v732_v36  ;;  %v578_v57 = vld [vmem:[%s2154_s1 + $0x2e8] sm:$0xff]  ;;  %v280_v0 = vrot.slane %v168_v45, 1  ;;  %v1289_v6 = vpack.c.bf16 %v1941_v42, %v1933_v38  ;;  %v288_v8 = vrot.slane %v1955_v52, 1 }
  0x3d   : > { %419 = vmatmul.mubr.f32.gmra.mrb[6].mxu0 %v1865_v3  ;;  %1280 = vmatprep.subr.bf16.mxu1 %v1279_v63  ;;  %v561_v58 = vld [vmem:[%s2154_s1 + $0x260] sm:$0xff]  ;;  %v562_v59 = vld [vmem:[%s2154_s1 + $0x268] sm:$0xff]  ;;  %v279_v63 = vrot.slane %v1944_v44, 1  ;;  %v289_v10 = vrot.slane %v173_v54, 1  ;;  %v1259_v19 = vpack.c.bf16 %v578_v57, %v577_v50  ;;  %v177_v23 = vld [vmem:[%s1631_s4 + $0x118] sm:$0x1] }
  0x3e   : > { %524 = vmatmul.mubr.f32.gmra.mrb[6].mxu1 %v1787_v29  ;;  %1250 = vmatpush3.bf16.msra.mxu0 %v1249_v4  ;;  %v734_v2 = vld [vmem:[%s2154_s1 + $0x3e0] sm:$0xff]  ;;  %v735_v4 = vld [vmem:[%s2154_s1 + $0x3e8] sm:$0xff]  ;;  %v176_v24 = vld [vmem:[%s1631_s4 + $0x110] sm:$0x1]  ;;  %v1261_v36 = vpack.c.bf16 %v562_v59, %v561_v58 }
  0x3f   : > { %423 = vmatprep.mubr.f32.mxu0 %v1891_v16  ;;  %528 = vmatprep.mubr.f32.mxu1 %v1810_v40  ;;  %v1982_v5 = vld [vmem:[%s1631_s4 + $0xe0] sm:$0xff]  ;;  %v1994_v13 = vld [vmem:[%s1631_s4 + $0x108] sm:$0xff]  ;;  %v579_v27 = vld [vmem:[%s2154_s1 + $0x2f0] sm:$0xff]  ;;  %v699_v34 = vrot.slane %v176_v24, 1  ;;  %v281_v35 = vsel %vm242_vm0, %v279_v63, %v280_v0  ;;  %v290_v50 = vsel %vm242_vm0, %v288_v8, %v289_v10 }
  0x40   : > { %1282 = vmatpush3.bf16.msra.mxu1 %v1281_v12  ;;  %1252 = vmatprep.subr.bf16.mxu0 %v1251_v17  ;;  %v718_v11 = vld [vmem:[%s2154_s1 + $0x360] sm:$0xff]  ;;  %v172_v12 = vld [vmem:[%s1631_s4 + $0xf0] sm:$0x1]  ;;  %v2000_v17 = vsel %vm242_vm0, %v282_v48, %v283_v49  ;;  %v701_v21 = vrot.slane %v1994_v13, 1  ;;  %v719_v26 = vld [vmem:[%s2154_s1 + $0x368] sm:$0xff]  ;;  %v285_v37 = vrot.slane %v1982_v5, 1 }
  0x41   : > { %424 = vmatmul.mubr.f32.gmra.mrb[8].mxu0 %v1920_v32  ;;  %1284 = vmatprep.subr.bf16.mxu1 %v1283_v25  ;;  %v1997_v15 = vld [vmem:[%s1631_s4 + $0x100] sm:$0xff]  ;;  %v1291_v25 = vpack.c.bf16 %v735_v4, %v734_v2  ;;  %v580_v30 = vld [vmem:[%s2154_s1 + $0x2f8] sm:$0xff]  ;;  %v286_v38 = vrot.slane %v172_v12, 1  ;;  %v563_v45 = vld [vmem:[%s2154_s1 + $0x270] sm:$0xff]  ;;  %v1293_v54 = vpack.c.bf16 %v719_v26, %v718_v11  ;;  %s2105_s4 = scalar_lea.hbm %s2155_s2, %s946_s26 }
  0x42   : > { %529 = vmatmul.mubr.f32.gmra.mrb[8].mxu1 %v1837_v53  ;;  %1254 = vmatpush3.bf16.msra.mxu0 %v1253_v33  ;;  %v698_v22 = vrot.slane %v1997_v15, 1  ;;  %v702_v33 = vrot.slane %v177_v23, 1  ;;  %v737_v42 = vld [vmem:[%s2154_s1 + $0x3f8] sm:$0xff]  ;;  %v720_v58 = vld [vmem:[%s2154_s1 + $0x370] sm:$0xff] }
  0x43   : > { %428 = vmatprep.mubr.f32.mxu0 %v1948_v46  ;;  %533 = vmatprep.mubr.f32.mxu1 %v1860_v1  ;;  %v721_v59 = vld [vmem:[%s2154_s1 + $0x378] sm:$0xff] }
  0x44   : > { %1286 = vmatpush3.bf16.msra.mxu1 %v1285_v39  ;;  %1256 = vmatprep.subr.bf16.mxu0 %v1255_v47  ;;  %v736_v39 = vld [vmem:[%s2154_s1 + $0x3f0] sm:$0xff]  ;;  %v564_v47 = vld [vmem:[%s2154_s1 + $0x278] sm:$0xff]  ;;  %v703_v48 = vsel %vm242_vm0, %v701_v21, %v702_v33  ;;  %v700_v49 = vsel %vm242_vm0, %v698_v22, %v699_v34  ;;  %v1297_v0 = vpack.c.bf16 %v721_v59, %v720_v58 }
  0x45   : > { %429 = vmatmul.mubr.f32.gmra.mrb[10].mxu0 %v1970_v61  ;;  %1288 = vmatprep.subr.bf16.mxu1 %v1287_v56  ;;  %v1263_v56 = vpack.c.bf16 %v580_v30, %v579_v27  ;;  %v1295_v57 = vpack.c.bf16 %v737_v42, %v736_v39  ;;  %v1265_v63 = vpack.c.bf16 %v564_v47, %v563_v45 }
  0x46   : > { %534 = vmatmul.mubr.f32.gmra.mrb[10].mxu1 %v1887_v14  ;;  %1258 = vmatpush3.bf16.msra.mxu0 %v1257_v62  ;;  %v287_v62 = vsel %vm242_vm0, %v285_v37, %v286_v38 }
  0x47   : > { %433 = vmatprep.mubr.f32.mxu0 %v2000_v17  ;;  %538 = vmatprep.mubr.f32.mxu1 %v1915_v28 }
  0x48   : > { %1290 = vmatpush3.bf16.msra.mxu1 %v1289_v6  ;;  %1260 = vmatprep.subr.bf16.mxu0 %v1259_v19 }
  0x49   : > { %434 = vmatmul.mubr.f32.gmra.mrb[12].mxu0 %v281_v35  ;;  %1292 = vmatprep.subr.bf16.mxu1 %v1291_v25 }
  0x4a   : > { %539 = vmatmul.mubr.f32.gmra.mrb[12].mxu1 %v1944_v44  ;;  %1262 = vmatpush3.bf16.msra.mxu0 %v1261_v36 }
  0x4b   : > { %438 = vmatprep.mubr.f32.mxu0 %v290_v50  ;;  %543 = vmatprep.mubr.f32.mxu1 %v1955_v52 }
  0x4c   : > { %1294 = vmatpush3.bf16.msra.mxu1 %v1293_v54  ;;  %1264 = vmatprep.subr.bf16.mxu0 %v1263_v56 }
  0x4d   : > { %439 = vmatmul.mubr.f32.gmra.mrb[14].mxu0 %v287_v62  ;;  %1296 = vmatprep.subr.bf16.mxu1 %v1295_v57 }
  0x4e   : > { %544 = vmatmul.mubr.f32.gmra.mrb[14].mxu1 %v1982_v5  ;;  %1266 = vmatpush3.bf16.msra.mxu0 %v1265_v63 }
  0x4f   : > { %645 = vmatprep.mubr.f32.mxu0 %v1693_v41  ;;  %802 = vmatprep.mubr.f32.mxu1 %v1745_v9 }
  0x50   : > { %1298 = vmatpush3.bf16.msra.mxu1 %v1297_v0 }
  0x51   : > { %646 = vmatmul.mubr.f32.vlgmr.msra.gmra.mrb[16].mxu0 %v1706_v51 }
  0x52   : > { %650 = vmatprep.mubr.f32.mxu0 %v1723_v60 }
  0x53   : > { %803 = vmatmul.mubr.f32.vlgmr.msra.gmra.mrb[16].mxu1 %v1767_v20 }
  0x54   : > { %807 = vmatprep.mubr.f32.mxu1 %v1791_v31 }
  0x55   : > { %651 = vmatmul.mubr.f32.gmra.mrb[18].mxu0 %v1741_v7 }
  0x56   : > { %655 = vmatprep.mubr.f32.mxu0 %v1763_v18 }
  0x57   : > { %808 = vmatmul.mubr.f32.gmra.mrb[18].mxu1 %v1815_v43 }
  0x58   : > { %812 = vmatprep.mubr.f32.mxu1 %v1841_v55 }
  0x59   : > { %656 = vmatmul.mubr.f32.gmra.mrb[20].mxu0 %v1787_v29 }
  0x5a   : > { %660 = vmatprep.mubr.f32.mxu0 %v1810_v40 }
  0x5b   : > { %813 = vmatmul.mubr.f32.gmra.mrb[20].mxu1 %v1865_v3 }
  0x5c   : > { %817 = vmatprep.mubr.f32.mxu1 %v1891_v16 }
  0x5d   : > { %661 = vmatmul.mubr.f32.gmra.mrb[22].mxu0 %v1837_v53 }
  0x5e   : > { %665 = vmatprep.mubr.f32.mxu0 %v1860_v1 }
  0x5f   : > { %818 = vmatmul.mubr.f32.gmra.mrb[22].mxu1 %v1920_v32 }
  0x60   : > { %822 = vmatprep.mubr.f32.mxu1 %v1948_v46 }
  0x61   : > { %666 = vmatmul.mubr.f32.gmra.mrb[24].mxu0 %v1887_v14 }
  0x62   : > { %670 = vmatprep.mubr.f32.mxu0 %v1915_v28 }
  0x63   : > { %823 = vmatmul.mubr.f32.gmra.mrb[24].mxu1 %v1970_v61 }
  0x64   : > { %827 = vmatprep.mubr.f32.mxu1 %v2000_v17 }
  0x65   : > { %671 = vmatmul.mubr.f32.gmra.mrb[26].mxu0 %v1944_v44 }
  0x66   : > { %675 = vmatprep.mubr.f32.mxu0 %v1955_v52 }
  0x67   : > { %828 = vmatmul.mubr.f32.gmra.mrb[26].mxu1 %v281_v35 }
  0x68   : > { %832 = vmatprep.mubr.f32.mxu1 %v290_v50 }
  0x69   : > { %676 = vmatmul.mubr.f32.gmra.mrb[28].mxu0 %v1982_v5 }
  0x6a   : > { %680 = vmatprep.mubr.f32.mxu0 %v1994_v13 }
  0x6b   : > { %833 = vmatmul.mubr.f32.gmra.mrb[28].mxu1 %v287_v62 }
  0x6c   : > { %837 = vmatprep.mubr.f32.mxu1 %v703_v48 }
  0x6d   : > { %681 = vmatmul.mubr.f32.gmra.mrb[30].mxu0 %v1997_v15 }
  0x6f   : > { %838 = vmatmul.mubr.f32.gmra.mrb[30].mxu1 %v700_v49 }
 0x104   : > { %v979_v41 = vpop.f32.mrb[0].mxu0 }
 0x105   : > { %v1035_v51 = vpop.f32.mrb[0].mxu1  ;;  %v980_v60 = vpop.f32.mrb[1].mxu0 }
 0x106   : > { %v981_v7 = vadd.f32 %v980_v60, %v979_v41  ;;  %v1036_v9 = vpop.f32.mrb[1].mxu1 }
 0x107   : > { %v1037_v18 = vadd.f32 %v1036_v9, %v1035_v51 }
 0x108   : > { %v982_v20 = vpop.f32.mrb[2].mxu0 }
 0x109   : > { %v511_v29 = vadd.f32 %v1037_v18, %v981_v7  ;;  %v1038_v31 = vpop.f32.mrb[2].mxu1  ;;  %v983_v40 = vpop.f32.mrb[3].mxu0 }
 0x10a   : > { %v984_v43 = vadd.f32 %v983_v40, %v982_v20  ;;  %v1039_v53 = vpop.f32.mrb[3].mxu1 }
 0x10b   : > { %v1040_v55 = vadd.f32 %v1039_v53, %v1038_v31 }
 0x10c   : > { %v985_v1 = vpop.f32.mrb[4].mxu0 }
 0x10d   : > { %v516_v3 = vadd.f32 %v1040_v55, %v984_v43  ;;  %v1041_v14 = vpop.f32.mrb[4].mxu1  ;;  %v986_v16 = vpop.f32.mrb[5].mxu0 }
 0x10e   : > { %v987_v28 = vadd.f32 %v986_v16, %v985_v1  ;;  %v1042_v32 = vpop.f32.mrb[5].mxu1 }
 0x10f   : > { %v1043_v44 = vadd.f32 %v1042_v32, %v1041_v14 }
 0x110   : > { %v988_v46 = vpop.f32.mrb[6].mxu0 }
 0x111   : > { %v521_v52 = vadd.f32 %v1043_v44, %v987_v28  ;;  %v1044_v61 = vpop.f32.mrb[6].mxu1  ;;  %v989_v2 = vpop.f32.mrb[7].mxu0 }
 0x112   : > { %v990_v4 = vadd.f32 %v989_v2, %v988_v46  ;;  %v1045_v5 = vpop.f32.mrb[7].mxu1 }
 0x113   : > { %v1046_v6 = vadd.f32 %v1045_v5, %v1044_v61 }
 0x114   : > { %v991_v8 = vpop.f32.mrb[8].mxu0 }
 0x115   : > { %v2073_v10 = vadd.f32 %v1046_v6, %v990_v4  ;;  %v1047_v11 = vpop.f32.mrb[8].mxu1  ;;  %v992_v12 = vpop.f32.mrb[9].mxu0 }
 0x116   : > { %v993_v13 = vadd.f32 %v992_v12, %v991_v8  ;;  %v1048_v15 = vpop.f32.mrb[9].mxu1 }
 0x117   : > { %v1049_v17 = vadd.f32 %v1048_v15, %v1047_v11 }
 0x118   : > { %v994_v19 = vpop.f32.mrb[10].mxu0 }
 0x119   : > { %v2075_v21 = vadd.f32 %v1049_v17, %v993_v13  ;;  %v1050_v22 = vpop.f32.mrb[10].mxu1  ;;  %v995_v23 = vpop.f32.mrb[11].mxu0 }
 0x11a   : > { %v996_v24 = vadd.f32 %v995_v23, %v994_v19  ;;  %v1051_v25 = vpop.f32.mrb[11].mxu1 }
 0x11b   : > { %v1052_v26 = vadd.f32 %v1051_v25, %v1050_v22 }
 0x11c   : > { %v997_v27 = vpop.f32.mrb[12].mxu0 }
 0x11d   : > { %v2077_v30 = vadd.f32 %v1052_v26, %v996_v24  ;;  %v1053_v33 = vpop.f32.mrb[12].mxu1  ;;  %v998_v34 = vpop.f32.mrb[13].mxu0 }
 0x11e   : > { %v999_v35 = vadd.f32 %v998_v34, %v997_v27  ;;  %v1054_v36 = vpop.f32.mrb[13].mxu1 }
 0x11f   : > { %v1055_v37 = vadd.f32 %v1054_v36, %v1053_v33 }
 0x120   : > { %v1000_v38 = vpop.f32.mrb[14].mxu0 }
 0x121   : > { %v2079_v39 = vadd.f32 %v1055_v37, %v999_v35  ;;  %v1056_v42 = vpop.f32.mrb[14].mxu1  ;;  %v1001_v45 = vpop.f32.mrb[15].mxu0 }
 0x122   : > { %v1002_v47 = vadd.f32 %v1001_v45, %v1000_v38  ;;  %v1057_v48 = vpop.f32.mrb[15].mxu1 }
 0x123   : > { %v1058_v49 = vadd.f32 %v1057_v48, %v1056_v42 }
 0x124   : > { %v1091_v50 = vpop.f32.mrb[16].mxu0 }
 0x125   : > { %v2082_v54 = vadd.f32 %v1058_v49, %v1002_v47  ;;  %v1092_v56 = vpop.f32.mrb[17].mxu0 }
 0x126   : > { %v1093_v57 = vadd.f32 %v1092_v56, %v1091_v50  ;;  %v1147_v58 = vpop.f32.mrb[16].mxu1 }
 0x127   : > { %v1148_v59 = vpop.f32.mrb[17].mxu1 }
 0x128   : > { %v686_v62 = vadd.f32 %v1093_v57, %v511_v29  ;;  %v1149_v63 = vadd.f32 %v1148_v59, %v1147_v58  ;;  %v1094_v0 = vpop.f32.mrb[18].mxu0 }
 0x129   : > { %v1095_v41 = vpop.f32.mrb[19].mxu0 }
 0x12a   : > { %v843_v51 = vadd.f32 %v1149_v63, %v686_v62  ;;  %v1096_v60 = vadd.f32 %v1095_v41, %v1094_v0  ;;  %v1150_v7 = vpop.f32.mrb[18].mxu1 }
 0x12b   : > { %v1151_v9 = vpop.f32.mrb[19].mxu1 }
 0x12c   : > { %851 = vst [vmem:[%s2086_s25] sm:$0xff] %v843_v51  ;;  %v687_v18 = vadd.f32 %v1096_v60, %v516_v3  ;;  %v1152_v20 = vadd.f32 %v1151_v9, %v1150_v7  ;;  %v1097_v31 = vpop.f32.mrb[20].mxu0 }
 0x12d   : > { %v1098_v40 = vpop.f32.mrb[21].mxu0 }
 0x12e   : > { %v844_v43 = vadd.f32 %v1152_v20, %v687_v18  ;;  %v1099_v53 = vadd.f32 %v1098_v40, %v1097_v31  ;;  %v1153_v29 = vpop.f32.mrb[20].mxu1 }
 0x12f   : > { %v1154_v55 = vpop.f32.mrb[21].mxu1 }
 0x130   : > { %852 = vst [vmem:[%s2086_s25 + $0x8] sm:$0xff] %v844_v43  ;;  %v688_v1 = vadd.f32 %v1099_v53, %v521_v52  ;;  %v1155_v14 = vadd.f32 %v1154_v55, %v1153_v29  ;;  %v1100_v16 = vpop.f32.mrb[22].mxu0 }
 0x131   : > { %v1101_v28 = vpop.f32.mrb[23].mxu0 }
 0x132   : > { %v845_v32 = vadd.f32 %v1155_v14, %v688_v1  ;;  %v1102_v44 = vadd.f32 %v1101_v28, %v1100_v16  ;;  %v1156_v46 = vpop.f32.mrb[22].mxu1 }
 0x133   : > { %v1157_v61 = vpop.f32.mrb[23].mxu1 }
 0x134   : > { %853 = vst [vmem:[%s2086_s25 + $0x10] sm:$0xff] %v845_v32  ;;  %v689_v3 = vadd.f32 %v1102_v44, %v2073_v10  ;;  %v1158_v2 = vadd.f32 %v1157_v61, %v1156_v46  ;;  %v1103_v4 = vpop.f32.mrb[24].mxu0 }
 0x135   : > { %v1104_v5 = vpop.f32.mrb[25].mxu0 }
 0x136   : > { %v846_v6 = vadd.f32 %v1158_v2, %v689_v3  ;;  %v1105_v8 = vadd.f32 %v1104_v5, %v1103_v4  ;;  %v1159_v11 = vpop.f32.mrb[24].mxu1 }
 0x137   : > { %v1160_v12 = vpop.f32.mrb[25].mxu1 }
 0x138   : > { %854 = vst [vmem:[%s2086_s25 + $0x18] sm:$0xff] %v846_v6  ;;  %v690_v52 = vadd.f32 %v1105_v8, %v2075_v21  ;;  %v1161_v13 = vadd.f32 %v1160_v12, %v1159_v11  ;;  %v1106_v15 = vpop.f32.mrb[26].mxu0 }
 0x139   : > { %v1107_v17 = vpop.f32.mrb[27].mxu0 }
 0x13a   : > { %v847_v19 = vadd.f32 %v1161_v13, %v690_v52  ;;  %v1108_v22 = vadd.f32 %v1107_v17, %v1106_v15  ;;  %v1162_v23 = vpop.f32.mrb[26].mxu1 }
 0x13b   : > { %v1163_v24 = vpop.f32.mrb[27].mxu1 }
 0x13c   : > { %855 = vst [vmem:[%s2086_s25 + $0x20] sm:$0xff] %v847_v19  ;;  %v691_v10 = vadd.f32 %v1108_v22, %v2077_v30  ;;  %v1164_v25 = vadd.f32 %v1163_v24, %v1162_v23  ;;  %v1109_v26 = vpop.f32.mrb[28].mxu0 }
 0x13d   : > { %v1110_v27 = vpop.f32.mrb[29].mxu0 }
 0x13e   : > { %v848_v33 = vadd.f32 %v1164_v25, %v691_v10  ;;  %v1111_v34 = vadd.f32 %v1110_v27, %v1109_v26  ;;  %v1165_v21 = vpop.f32.mrb[28].mxu1 }
 0x13f   : > { %v1166_v35 = vpop.f32.mrb[29].mxu1 }
 0x140   : > { %856 = vst [vmem:[%s2086_s25 + $0x28] sm:$0xff] %v848_v33  ;;  %v692_v36 = vadd.f32 %v1111_v34, %v2079_v39  ;;  %v1167_v37 = vadd.f32 %v1166_v35, %v1165_v21  ;;  %v1112_v38 = vpop.f32.mrb[30].mxu0 }
 0x141   : > { %v1113_v42 = vpop.f32.mrb[31].mxu0 }
 0x142   : > { %v849_v45 = vadd.f32 %v1167_v37, %v692_v36  ;;  %v1114_v30 = vadd.f32 %v1113_v42, %v1112_v38  ;;  %v1168_v47 = vpop.f32.mrb[30].mxu1 }
 0x143   : > { %v1169_v48 = vpop.f32.mrb[31].mxu1 }
 0x144   : > { %857 = vst [vmem:[%s2086_s25 + $0x30] sm:$0xff] %v849_v45  ;;  %v693_v49 = vadd.f32 %v1114_v30, %v2082_v54  ;;  %v1170_v50 = vadd.f32 %v1169_v48, %v1168_v47 }
 0x146   : > { %v850_v39 = vadd.f32 %v1170_v50, %v693_v49 }
 0x148   : > { %858 = vst [vmem:[%s2086_s25 + $0x38] sm:$0xff] %v850_v39 }
 0x149   : > { %1354 = shalt.err (!%p1351_p3)
}
 0x14a   : > { %s1355_s14 = scalar_lea.hbm %s2105_s4, 1024  ;;  %s1359_s17 = scalar_lea.hbm %s2155_s2, 2048 }
 0x14b   : > { %p1356_p4 = scmp.ne.s32.totalorder %s2105_s4, %s1355_s14  ;;  %p1360_p9 = scmp.lt.u32.totalorder %s2105_s4, %s2155_s2 }
 0x14c   : > { %p1361_p10 = scmp.lt.u32.totalorder %s1359_s17, %s1355_s14  ;;  %p1363_p12 = scmp.lt.u32.totalorder %s1355_s14, %s2105_s4 }
 0x14d   : > { %p1357_p7 = pnand %p1356_p4, %p1461_p5 }
 0x14e   : > { %p1362_p11 = por %p1361_p10, %p1360_p9 }
 0x14f   : > { %p1358_p8 = pneg %p1357_p7 }
 0x150   : > { %p1364_p13 = por %p1363_p12, %p1362_p11 }
 0x152   : > { %p1365_p0 = pnand %p1364_p13, %p1358_p8 }
 0x154   : > { %1368 = shalt.err (!%p1365_p0)
}
 0x155   : > { %s1406_s22 = smov 128   ;;  %s1407_s23 = smov 8  }
 0x156   : > { %1300 = dma.vmem_to_hbm [thread:$0]  (%p1461_p5), %s2107_s27, 1024, %s2105_s4, %s2112_s13, %s1406_s22, %s1406_s22, %s1407_s23  }
 0x157 PF: > { %p1306_p1 = scmp.ge.s32.totalorder %s1403_s12, 2  ;;  %s888_s24 = sand.u32 1, %s1391_s9  }
 0x158   : > { %s889_s25 = scalar_lea.sflag [#allocation3], %s888_s24 }
 0x159   : > { %p1303_p2 = pnand %p1306_p1, %p1465_p6 }
 0x15b   : > { %1386 = dma.done.wait (!%p1303_p2), %s889_s25, 1024  }
 0x15c   : > { %1388 = vsyncadd (!%p1303_p2), %s889_s25, 4294966272  ;;  %p12_p3 = scmp.ge.s32.totalorder %s1448_s15, 4   ;;  %s2158_s9 = smov %s1395_s10 }
 0x15d   : > { %s2159_s10 = smov %s1399_s11  ;;  %s2160_s11 = smov %s1459_s18 }
 0x15e   : > { %s2161_s12 = smov %s1448_s15  ;;  %14 = sbr.rel (!%p12_p3) target bundleno = 3 (0x3), region = 63 }
 0x165   :  { %894 = vsyncpa [#allocation3], 1 }
 0x166   :  { %896 = vsyncpa [#allocation3 + $0x1], 1 }

</bundles_post_ra>
